<compile_context>
chip_gen: v5e
topology: v5e:2x2
jax: 0.10.0
libtpu: 0.0.40
codegen_flags: <defaults>
</compile_context>

<pallas_src>
import jax
import jax.numpy as jnp
from jax.experimental import pallas as pl
from jax.experimental.pallas import tpu as pltpu


def _mtl_kernel(packed_ref, out_ref):
    # packed_ref: (T, 1+L) f32 in VMEM; column 0 = log_deta2, columns 1.. = losses.
    # out_ref:    (1, 1)   f32 in SMEM; scalar total loss.
    x = packed_ref[...]                          # (T, 1+L)
    ld = x[:, 0:1]                               # (T, 1)  log_deta2 column
    losses = x[:, 1:]                            # (T, L)

    pre = jnp.exp(-ld)                           # (T, 1)  pre_i = exp(-log_deta2_i)

    # softmax over tasks (numerically stable); exact divide to hold 1e-5 tol.
    m = jnp.max(pre, axis=0, keepdims=True)      # (1, 1)
    e = jnp.exp(pre - m)                         # (T, 1)
    w = e / jnp.sum(e, axis=0, keepdims=True)    # (T, 1)

    # elementwise: w_i * loss[i, j] + log_deta2_i  (broadcast (T,1) over lanes),
    # then a single full reduce straight to a scalar.
    contrib = losses * w + ld                    # (T, L)
    out_ref[0, 0] = jnp.sum(contrib)             # scalar -> SMEM


def mtl_forward(log_deta2, losses):
    """log_deta2: (T,) f32 parameter; losses: (T, L) f32 stacked loss list."""
    T, L = losses.shape
    # Pack the parameter as an extra leading column -> one input DMA.
    packed = jnp.concatenate(
        [log_deta2.reshape(T, 1).astype(jnp.float32),
         losses.astype(jnp.float32)],
        axis=1,
    )                                            # (T, 1+L)
    out = pl.pallas_call(
        _mtl_kernel,
        out_shape=jax.ShapeDtypeStruct((1, 1), jnp.float32),
        in_specs=[pl.BlockSpec((T, L + 1), lambda: (0, 0))],
        out_specs=pl.BlockSpec(memory_space=pltpu.MemorySpace.SMEM),
    )(packed)
    return out[0, 0]


def mtl_reference(log_deta2, losses):
    """Pure-JAX reference mirroring the PyTorch forward."""
    pre = jnp.exp(-log_deta2)                    # (T,)
    w = jax.nn.softmax(pre, axis=-1)             # (T,)
    total = 0.0
    for i in range(losses.shape[0]):
        total = total + jnp.sum(w[i] * losses[i] + log_deta2[i], axis=-1)
    return total


if __name__ == "__main__":
    num_task = 3
    loss_len = 8  # each per-task loss is a length-8 vector

    key = jax.random.PRNGKey(0)
    k_loss, k_ld = jax.random.split(key)

    # Case 1: parameter init matching nn.Parameter(torch.zeros(num_task)).
    log_deta2_zero = jnp.zeros((num_task,), dtype=jnp.float32)
    losses = jax.random.uniform(k_loss, (num_task, loss_len), dtype=jnp.float32)

    out = jax.block_until_ready(mtl_forward(log_deta2_zero, losses))
    ref = mtl_reference(log_deta2_zero, losses)
    assert jnp.allclose(out, ref, rtol=1e-5, atol=1e-5), (out, ref)

    # Case 2: non-trivial log_deta2 to exercise the softmax weighting path.
    log_deta2_rand = 0.5 * jax.random.normal(k_ld, (num_task,), dtype=jnp.float32)
    out2 = jax.block_until_ready(mtl_forward(log_deta2_rand, losses))
    ref2 = mtl_reference(log_deta2_rand, losses)
    assert jnp.allclose(out2, ref2, rtol=1e-5, atol=1e-5), (out2, ref2)

    print("KERNEL_OK")
</pallas_src>

<mosaic_0001>
module attributes {stable_mosaic.version = 11 : i64} {
  func.func @_mtl_kernel(%arg0: memref<3x9xf32, #tpu.memory_space<vmem>>, %arg1: memref<1x1xf32, #tpu.memory_space<smem>>) attributes {dimension_semantics = [], scalar_prefetch = 0 : i64, scratch_operands = 0 : i64, tpu.core_type = #tpu.core_type<tc>} {
    %c0 = arith.constant 0 : index
    %c0_0 = arith.constant 0 : index
    %0 = vector.load %arg0[%c0, %c0_0] : memref<3x9xf32, #tpu.memory_space<vmem>>, vector<3x9xf32>
    %1 = vector.extract_strided_slice %0 {offsets = [0, 0], sizes = [3, 1], strides = [1, 1]} : vector<3x9xf32> to vector<3x1xf32>
    %2 = vector.extract_strided_slice %0 {offsets = [0, 1], sizes = [3, 8], strides = [1, 1]} : vector<3x9xf32> to vector<3x8xf32>
    %cst = arith.constant 0.000000e+00 : f32
    %3 = vector.broadcast %cst : f32 to vector<3x1xf32>
    %4 = arith.subf %3, %1 : vector<3x1xf32>
    %5 = math.exp %4 : vector<3x1xf32>
    %cst_1 = arith.constant dense<0xFF800000> : vector<1xf32>
    %6 = vector.multi_reduction <maximumf>, %5, %cst_1 [0] : vector<3x1xf32> to vector<1xf32>
    %7 = vector.shape_cast %6 : vector<1xf32> to vector<1x1xf32>
    %8 = vector.broadcast %7 : vector<1x1xf32> to vector<3x1xf32>
    %9 = arith.subf %5, %8 : vector<3x1xf32>
    %10 = math.exp %9 : vector<3x1xf32>
    %cst_2 = arith.constant dense<0.000000e+00> : vector<1xf32>
    %11 = vector.multi_reduction <add>, %10, %cst_2 [0] : vector<3x1xf32> to vector<1xf32>
    %12 = vector.shape_cast %11 : vector<1xf32> to vector<1x1xf32>
    %13 = vector.broadcast %12 : vector<1x1xf32> to vector<3x1xf32>
    %14 = arith.divf %10, %13 : vector<3x1xf32>
    %15 = vector.broadcast %14 : vector<3x1xf32> to vector<3x8xf32>
    %16 = arith.mulf %2, %15 : vector<3x8xf32>
    %17 = vector.broadcast %1 : vector<3x1xf32> to vector<3x8xf32>
    %18 = arith.addf %16, %17 : vector<3x8xf32>
    %19 = vector.shape_cast %18 : vector<3x8xf32> to vector<1x3x8xf32>
    %cst_3 = arith.constant dense<0.000000e+00> : vector<1xf32>
    %20 = vector.multi_reduction <add>, %19, %cst_3 [1, 2] : vector<1x3x8xf32> to vector<1xf32>
    %21 = vector.shape_cast %20 : vector<1xf32> to vector<1x1x1xf32>
    %22 = vector.extract %21[0, 0, 0] : f32 from vector<1x1x1xf32>
    %c0_4 = arith.constant 0 : index
    %c0_5 = arith.constant 0 : index
    %23 = memref.load %arg1[%c0_4, %c0_5] : memref<1x1xf32, #tpu.memory_space<smem>>
    memref.store %22, %arg1[%c0_4, %c0_5] : memref<1x1xf32, #tpu.memory_space<smem>>
    return
  }
}

</mosaic_0001>

<bundles_post_ra>
// kernel: tpu_custom_call.1
= control target key start
LH: loop header
LB: loop body
LE: loop exit
PB: predicated region body
PF: predicated region fallthrough
CT: control target
= control target key end

     0   :  { %6 = vsyncpa [#allocation3], 0  ;;  %s178_s0 = inlined_call_operand.hbm [shape: f32[3,9], index: 0, kind: input, shape index: {}]   ;;  %s179_s1 = inlined_call_operand.hbm [shape: f32[1,1], index: 1, kind: output, shape index: {}]  }
   0x1   :  { %7 = vsyncpa [#allocation4], 0  ;;  %s13_s8 = sshll.u32 %s178_s0, 4  ;;  %s158_s9 = smov [#allocation2]   ;;  %s14_s8 = int_to_ptr.hbm [resolvable:$true] %s13_s8 }
   0x2   :  { %s15_s10 = sshll.u32 %s158_s9, 4  ;;  %s16_s10 = int_to_ptr.vmem [resolvable:$true] %s15_s10 }
   0x3   :  { %18 = dma.hbm_to_vmem [thread:$0]  %s14_s8, 64, %s16_s10, [#allocation3]  }
   0x4   :  { %154 = dma.done.wait [#allocation3], 64  }
   0x5   :  { %155 = vsyncadd [#allocation3], 4294967232  ;;  %v159_v0 = vmov 0   ;;  %v23_v1 = vld [vmem:[#allocation2] sm:$0x7]  ;;  %vm27_vm0 = vcmask 2048  }
   0x6   :  { %111 = vset.pattern.permute.xlu0 %v159_v0  ;;  %v24_v2 = vsub.f32 0.0, %v23_v1  ;;  %s160_s0 = smov 127   ;;  %vm76_vm5 = vcmask 59392   ;;  %s94_s13 = sshll.u32 %s179_s1, 4  ;;  %s95_s13 = int_to_ptr.hbm [resolvable:$true] %s94_s13 }
   0x7   :  { %s161_s15 = smov [#allocation5]  }
   0x8   :  { %v25_v3 = vmul.f32 1.442695, %v24_v2 }
   0xa   :  { %112 = vpow2.f32 %v25_v3 }
  0x10   :  { %v113_v4 = vpop.eup %112 }
  0x11   :  { %v28_v5 = vsel %vm27_vm0, %v113_v4, -inf }
  0x12   :  { %v29_v6 = vrot.slane %v28_v5, 4 }
  0x14   :  { %v30_v7 = vmax.f32 %v28_v5, %v29_v6 }
  0x16   :  { %v31_v8 = vrot.slane %v30_v7, 2 }
  0x18   :  { %v32_v9 = vmax.f32 %v30_v7, %v31_v8 }
  0x1a   :  { %v33_v10 = vrot.slane %v32_v9, 1 }
  0x1c   :  { %v34_v11 = vmax.f32 %v32_v9, %v33_v10 }
  0x1e   :  { %v35_v12 = vsub.f32 %v113_v4, %v34_v11 }
  0x20   :  { %v36_v13 = vmul.f32 1.442695, %v35_v12 }
  0x22   :  { %114 = vpow2.f32 %v36_v13 }
  0x28   :  { %v115_v14 = vpop.eup %114 }
  0x29   :  { %v38_v15 = vsel %vm27_vm0, %v115_v14, 0.0 }
  0x2a   :  { %v39_v16 = vrot.slane %v38_v15, 4 }
  0x2c   :  { %v40_v17 = vadd.f32 %v39_v16, %v38_v15 }
  0x2e   :  { %v41_v18 = vrot.slane %v40_v17, 2 }
  0x30   :  { %v42_v19 = vadd.f32 %v41_v18, %v40_v17 }
  0x32   :  { %v43_v20 = vrot.slane %v42_v19, 1 }
  0x34   :  { %v44_v21 = vadd.f32 %v43_v20, %v42_v19 }
  0x36   :  { %116 = vrcp.f32 %v44_v21  ;;  %v56_v24 = vand.u32 2147483648, %v44_v21  ;;  %vm50_vm1 = vweird.f32 %v44_v21  ;;  %v54_v26 = vand.u32 2147483647, %v44_v21 }
  0x38   :  { %v57_v28 = vor.u32 1.1754944e-38, %v56_v24  ;;  %vm55_vm4 = vcmp.eq.f32.partialorder %v54_v26, 8.507059e+37 }
  0x3c   :  { %v117_v22 = vpop.eup %116 }
  0x3d   :  { %v46_v23 = vmul.f32 %v117_v22, %v44_v21  ;;  %vm51_vm2 = vweird.f32 %v117_v22 }
  0x3e   :  { %vm52_vm3 = vmor %vm50_vm1, %vm51_vm2 }
  0x3f   :  { %v47_v25 = vsub.f32 1.0, %v46_v23 }
  0x41   :  { %v48_v27 = vmul.f32 %v117_v22, %v47_v25 }
  0x43   :  { %v49_v29 = vadd.f32 %v117_v22, %v48_v27 }
  0x45   :  { %v53_v30 = vsel %vm52_vm3, %v117_v22, %v49_v29 }
  0x46   :  { %v58_v31 = vsel %vm55_vm4, %v57_v28, %v53_v30 }
  0x47   :  { %v59_v32 = vmul.f32 %v115_v14, %v58_v31 }
  0x49   :  { %62 = vperm.xlu0 %111, %v59_v32  }
  0x51   :  { %68 = vperm.xlu0 %111, %v23_v1  }
  0xbb   :  { %v63_v33 = vpop.permute.xlu0 %62 }
  0xbc   :  { %v65_v34 = vmul.f32 %v63_v33, %v23_v1 }
  0xc3   :  { %v69_v35 = vpop.permute.xlu0 %68 }
  0xc4   :  { %v71_v36 = vadd.f32 %v69_v35, %v65_v34 }
  0xc6   :  { %73 = vrot.lane.b32.xlu1 %v71_v36, %s160_s0 }
 0x138   :  { %v74_v37 = vpop.permute.xlu1 %73 }
 0x139   :  { %v77_v38 = vsel %vm76_vm5, %v74_v37, 0.0 }
 0x13a   :  { %78 = vadd.xlane.f32.xlu1 %v77_v38 }
 0x1ad   :  { %v79_v39 = vpop.xlane.xlu1 %78 }
 0x1ae   :  { %v80_v40 = vrot.slane %v79_v39, 4 }
 0x1b0   :  { %v81_v41 = vadd.f32 %v80_v40, %v79_v39 }
 0x1b2   :  { %v82_v42 = vrot.slane %v81_v41, 2 }
 0x1b4   :  { %v83_v43 = vadd.f32 %v82_v42, %v81_v41 }
 0x1b6   :  { %v84_v44 = vrot.slane %v83_v43, 1 }
 0x1b8   :  { %v85_v45 = vadd.f32 %v84_v44, %v83_v43 }
 0x1ba   :  { %105 = vpush %v85_v45 }
 0x1eb   :  { %s106_s14 = spop %105 }
 0x1ec   :  { %88 = sst [smem:[#allocation5]] %s106_s14 }
 0x1ed   :  { %97 = dma.smem_to_hbm %s161_s15, 16, %s95_s13, [#allocation4]  }
 0x1ee   :  { %156 = dma.done.wait [#allocation4], 16  }
 0x1ef   :  { %157 = vsyncadd [#allocation4], 4294967280 }
 0x1f0   :  { %102 = sfence }
 0x1f1   :  { %103 = vsyncpa [#allocation3], 1 }
 0x1f2   :  { %104 = vsyncpa [#allocation4], 1 }

</bundles_post_ra>
